<compile_context>
chip_gen: v6e
topology: v6e:2x2x1
jax: 0.10.0
libtpu: 0.0.40
codegen_flags: <defaults>
</compile_context>

<pallas_src>
import math
import functools

import jax
import jax.numpy as jnp
from jax.experimental import pallas as pl
from jax.experimental.pallas import tpu as pltpu


def _dot(a, b, *, trans_b=False):
    """2-D MXU matmul with f32 accumulation (operands typically bf16)."""
    dims = (((1,), (1,)), ((), ())) if trans_b else (((1,), (0,)), ((), ()))
    return jax.lax.dot_general(a, b, dims, preferred_element_type=jnp.float32)


def _lora_attention_kernel(
    q_ref, k_ref, v_ref, mask_ref, wo_ref, res_ref, bo_ref, gamma_ref, beta_ref,
    out_ref,
    m_scr, l_scr, ctx_scr, acc_ref,
    *, ln_eps,
):
    head = pl.program_id(2)
    kv = pl.program_id(3)
    num_heads = pl.num_programs(2)
    num_kv = pl.num_programs(3)

    # Zero the output-projection accumulator at the first (head, kv) step of
    # this (batch, q-tile).
    @pl.when(jnp.logical_and(head == 0, kv == 0))
    def _zero_acc():
        acc_ref[...] = jnp.zeros_like(acc_ref)

    # Per-head init: reset the online-softmax state (Q arrives pre-projected
    # and pre-scaled from the wrapper, so there is nothing else to do).
    @pl.when(kv == 0)
    def _init_head():
        m_scr[...] = jnp.full_like(m_scr, -jnp.inf)
        l_scr[...] = jnp.zeros_like(l_scr)
        ctx_scr[...] = jnp.zeros_like(ctx_scr)

    # scores = (Q / sqrt(d)) @ K^T + mask   (contract last dims, no explicit .T)
    s = _dot(q_ref[...], k_ref[...], trans_b=True)            # [tq, tk] f32
    s = s + mask_ref[...].astype(jnp.float32)                  # mask is bf16

    # Online (flash-style) softmax update; stats in f32, probs in bf16.
    m_prev = m_scr[...]
    m_new = jnp.maximum(m_prev, jnp.max(s, axis=-1, keepdims=True))
    alpha = jnp.exp(m_prev - m_new)
    p = jnp.exp((s - m_new).astype(jnp.bfloat16))              # bf16 EUP (v6e/v7x)
    l_scr[...] = alpha * l_scr[...] + jnp.sum(p, axis=-1, keepdims=True,
                                              dtype=jnp.float32)
    ctx_scr[...] = alpha * ctx_scr[...] + _dot(p, v_ref[...])  # [tq, d] f32
    m_scr[...] = m_new

    # Last kv tile of this head: normalize, accumulate the output projection.
    # Last head: bias + residual + LayerNorm, write the output tile.
    @pl.when(kv == num_kv - 1)
    def _finalize_head():
        inv_l = pl.reciprocal(l_scr[...], approx=True)
        ctx = (ctx_scr[...] * inv_l).astype(jnp.bfloat16)       # [tq, d]
        acc_ref[...] = acc_ref[...] + _dot(ctx, wo_ref[...])    # [tq, H]

        @pl.when(head == num_heads - 1)
        def _write():
            x = acc_ref[...] + bo_ref[...] + res_ref[...]       # [tq, H] f32
            mean = jnp.mean(x, axis=-1, keepdims=True)
            var = jnp.mean(x * x, axis=-1, keepdims=True) - mean * mean
            var = jnp.maximum(var, 0.0)                         # clamp cancellation
            y = (x - mean) * jax.lax.rsqrt(var + ln_eps)
            out_ref[...] = (y * gamma_ref[...] + beta_ref[...]).astype(out_ref.dtype)


def _pick_tile(s, cap):
    """Largest of (cap, 256, 128) that evenly tiles s, else full extent."""
    for t in (cap, 256, 128):
        if s > t and s % t == 0:
            return t
    return s


def _vmem_estimate(tq, tk, H, d):
    """Rough double-buffered VMEM footprint in bytes."""
    bf2, f4 = 2, 4
    inputs = (tq * d * bf2          # Q
              + 2 * tk * d * bf2    # K, V
              + tq * tk * bf2       # mask
              + d * H * bf2         # Wo_h
              + tq * H * f4         # residual (f32)
              + 3 * H * f4)         # bo, gamma, beta
    out = tq * H * f4
    scratch = tq * H * f4 + tq * d * f4 + 2 * tq * f4
    return 2 * (inputs + out) + scratch


def lora_attention(hidden_states, encoder_hidden_states, attention_mask, params,
                   *, num_heads, lora_scaling, ln_eps):
    B, Sq, H = hidden_states.shape
    _, Skv, _ = encoder_hidden_states.shape
    assert H % num_heads == 0
    d = H // num_heads

    # ---- chip-aware tile choice: 512 on 128 MiB VMEM (v5e/v6e), 256 on v7x ----
    try:
        vmem_cap = int(pltpu.get_tpu_info().vmem_capacity_bytes)
    except Exception:
        vmem_cap = 64 << 20
    tile_cap = 512 if vmem_cap > (96 << 20) else 256
    tq = _pick_tile(Sq, tile_cap)
    tk = _pick_tile(Skv, tile_cap)

    vmem_need = _vmem_estimate(tq, tk, H, d)
    vmem_limit = None
    if vmem_need > (30 << 20):  # above the conservative scoped default
        vmem_limit = min(vmem_need * 3 // 2, vmem_cap * 3 // 4)

    # ---- wrapper-side projections (hoisted out of the kernel grid) ----
    f32 = jnp.float32
    hs = hidden_states.astype(f32)
    enc = encoder_hidden_states.astype(f32)
    wv = (params["wa"].astype(f32) @ params["wb"].astype(f32)) * lora_scaling

    def to_heads(x, S):  # [B, S, H] -> [B, nh, S, d]
        return x.reshape(B, S, num_heads, d).transpose(0, 2, 1, 3)

    q = (hs @ params["wq"] + params["bq"]) * (1.0 / math.sqrt(d))
    k = enc @ params["wk"] + params["bk"]
    v = enc @ wv
    q_h = to_heads(q, Sq).astype(jnp.bfloat16)        # [B, nh, Sq, d]
    k_h = to_heads(k, Skv).astype(jnp.bfloat16)       # [B, nh, Skv, d]
    v_h = to_heads(v, Skv).astype(jnp.bfloat16)       # [B, nh, Skv, d]
    wo_h = params["wo"].reshape(num_heads, d, H).astype(jnp.bfloat16)
    bo = params["bo"].reshape(1, H).astype(f32)
    gamma = params["gamma"].reshape(1, H).astype(f32)
    beta = params["beta"].reshape(1, H).astype(f32)
    mask = attention_mask.astype(jnp.bfloat16)        # additive mask, halved DMA

    kernel = functools.partial(_lora_attention_kernel, ln_eps=ln_eps)

    # Note (v7x): only the first two ("parallel") axes feed the 2nd TensorCore;
    # B * (Sq // tq) >= 2 is needed for both cores to get work.
    grid = (B, Sq // tq, num_heads, Skv // tk)

    return pl.pallas_call(
        kernel,
        out_shape=jax.ShapeDtypeStruct((B, Sq, H), jnp.float32),
        grid_spec=pltpu.PrefetchScalarGridSpec(
            num_scalar_prefetch=0,
            grid=grid,
            in_specs=[
                pl.BlockSpec((None, None, tq, d), lambda b, qi, h, kv: (b, h, qi, 0)),  # Q bf16
                pl.BlockSpec((None, None, tk, d), lambda b, qi, h, kv: (b, h, kv, 0)),  # K bf16
                pl.BlockSpec((None, None, tk, d), lambda b, qi, h, kv: (b, h, kv, 0)),  # V bf16
                pl.BlockSpec((None, tq, tk), lambda b, qi, h, kv: (b, qi, kv)),         # mask bf16
                pl.BlockSpec((None, d, H), lambda b, qi, h, kv: (h, 0, 0)),             # Wo_h bf16
                pl.BlockSpec((None, tq, H), lambda b, qi, h, kv: (b, qi, 0)),           # residual f32
                pl.BlockSpec((1, H), lambda b, qi, h, kv: (0, 0)),                      # bo
                pl.BlockSpec((1, H), lambda b, qi, h, kv: (0, 0)),                      # gamma
                pl.BlockSpec((1, H), lambda b, qi, h, kv: (0, 0)),                      # beta
            ],
            out_specs=pl.BlockSpec((None, tq, H), lambda b, qi, h, kv: (b, qi, 0)),
            scratch_shapes=[
                pltpu.VMEM((tq, 1), jnp.float32),   # running max
                pltpu.VMEM((tq, 1), jnp.float32),   # running denom
                pltpu.VMEM((tq, d), jnp.float32),   # running context
                pltpu.VMEM((tq, H), jnp.float32),   # output-projection accumulator
            ],
        ),
        compiler_params=pltpu.CompilerParams(
            dimension_semantics=("parallel", "parallel", "arbitrary", "arbitrary"),
            vmem_limit_bytes=vmem_limit),
    )(q_h, k_h, v_h, mask, wo_h, hs, bo, gamma, beta)


def _reference(hidden_states, encoder_hidden_states, attention_mask, params,
               *, num_heads, lora_scaling, ln_eps):
    B, Sq, H = hidden_states.shape
    _, Skv, _ = encoder_hidden_states.shape
    d = H // num_heads
    q = hidden_states @ params["wq"] + params["bq"]
    k = encoder_hidden_states @ params["wk"] + params["bk"]
    v = (encoder_hidden_states @ params["wa"]) @ params["wb"] * lora_scaling

    def to_heads(x, S):
        return x.reshape(B, S, num_heads, d).transpose(0, 2, 1, 3)

    qh, kh, vh = to_heads(q, Sq), to_heads(k, Skv), to_heads(v, Skv)
    scores = jnp.einsum("bhqd,bhkd->bhqk", qh, kh) / math.sqrt(d)
    scores = scores + attention_mask[:, None, :, :]
    probs = jax.nn.softmax(scores, axis=-1)
    ctx = jnp.einsum("bhqk,bhkd->bhqd", probs, vh)
    ctx = ctx.transpose(0, 2, 1, 3).reshape(B, Sq, H)
    out = ctx @ params["wo"] + params["bo"]
    x = out + hidden_states
    mean = jnp.mean(x, axis=-1, keepdims=True)
    var = jnp.mean((x - mean) ** 2, axis=-1, keepdims=True)
    return (x - mean) / jnp.sqrt(var + ln_eps) * params["gamma"] + params["beta"]


if __name__ == "__main__":
    # Small config consistent with the module.
    B, Sq, Skv, H = 2, 8, 8, 32
    num_heads, lora_r, lora_alpha = 4, 4, 8
    lora_scaling = lora_alpha / lora_r
    ln_eps = 1e-12

    key = jax.random.PRNGKey(0)
    ks = jax.random.split(key, 12)
    scale = 0.05
    params = {
        "wq": scale * jax.random.normal(ks[0], (H, H), jnp.float32),
        "bq": scale * jax.random.normal(ks[1], (1, H), jnp.float32),
        "wk": scale * jax.random.normal(ks[2], (H, H), jnp.float32),
        "bk": scale * jax.random.normal(ks[3], (1, H), jnp.float32),
        "wa": scale * jax.random.normal(ks[4], (H, lora_r), jnp.float32),
        "wb": scale * jax.random.normal(ks[5], (lora_r, H), jnp.float32),
        "wo": scale * jax.random.normal(ks[6], (H, H), jnp.float32),
        "bo": scale * jax.random.normal(ks[7], (1, H), jnp.float32),
        "gamma": jnp.ones((1, H), jnp.float32),
        "beta": jnp.zeros((1, H), jnp.float32),
    }

    hidden_states = jax.random.normal(ks[8], (B, Sq, H), jnp.float32)
    encoder_hidden_states = jax.random.normal(ks[9], (B, Skv, H), jnp.float32)
    # Additive mask: mask out the last 2 kv positions of batch 1 (finite -1e9,
    # as HF-style masks use; fully -inf rows would NaN the online softmax).
    attention_mask = jnp.zeros((B, Sq, Skv), jnp.float32)
    attention_mask = attention_mask.at[1, :, -2:].set(-1e9)

    out = lora_attention(
        hidden_states, encoder_hidden_states, attention_mask, params,
        num_heads=num_heads, lora_scaling=lora_scaling, ln_eps=ln_eps,
    )
    out = jax.block_until_ready(out)

    ref = _reference(
        hidden_states, encoder_hidden_states, attention_mask, params,
        num_heads=num_heads, lora_scaling=lora_scaling, ln_eps=ln_eps,
    )
    assert out.shape == (B, Sq, H)
    # bf16 Q/K/V/mask/probs + approx reciprocal -> relaxed tolerance vs f32 ref.
    err = float(jnp.max(jnp.abs(out - ref)))
    assert err < 2e-2, err
    print("KERNEL_OK")
</pallas_src>

<mosaic_0001>
module attributes {stable_mosaic.version = 11 : i64} {
  func.func @_lora_attention_kernel(%arg0: i32, %arg1: i32, %arg2: i32, %arg3: i32, %arg4: memref<1x1x8x8xbf16, #tpu.memory_space<vmem>>, %arg5: memref<1x1x8x8xbf16, #tpu.memory_space<vmem>>, %arg6: memref<1x1x8x8xbf16, #tpu.memory_space<vmem>>, %arg7: memref<1x8x8xbf16, #tpu.memory_space<vmem>>, %arg8: memref<1x8x32xbf16, #tpu.memory_space<vmem>>, %arg9: memref<1x8x32xf32, #tpu.memory_space<vmem>>, %arg10: memref<1x32xf32, #tpu.memory_space<vmem>>, %arg11: memref<1x32xf32, #tpu.memory_space<vmem>>, %arg12: memref<1x32xf32, #tpu.memory_space<vmem>>, %arg13: memref<1x8x32xf32, #tpu.memory_space<vmem>>, %arg14: memref<8x1xf32, #tpu.memory_space<vmem>>, %arg15: memref<8x1xf32, #tpu.memory_space<vmem>>, %arg16: memref<8x8xf32, #tpu.memory_space<vmem>>, %arg17: memref<8x32xf32, #tpu.memory_space<vmem>>) attributes {dimension_semantics = [#tpu.dimension_semantics<parallel>, #tpu.dimension_semantics<parallel>, #tpu.dimension_semantics<arbitrary>, #tpu.dimension_semantics<arbitrary>], iteration_bounds = array<i64: 2, 1, 4, 1>, scalar_prefetch = 0 : i64, scratch_operands = 4 : i64, tpu.core_type = #tpu.core_type<tc>, window_params = [{transform_indices = @transform_0, window_bounds = array<i64: 1, 1, 8, 8>}, {transform_indices = @transform_1, window_bounds = array<i64: 1, 1, 8, 8>}, {transform_indices = @transform_2, window_bounds = array<i64: 1, 1, 8, 8>}, {transform_indices = @transform_3, window_bounds = array<i64: 1, 8, 8>}, {transform_indices = @transform_4, window_bounds = array<i64: 1, 8, 32>}, {transform_indices = @transform_5, window_bounds = array<i64: 1, 8, 32>}, {pipeline_mode = #tpu.pipeline_mode<synchronous>, transform_indices = @transform_6, window_bounds = array<i64: 1, 32>}, {pipeline_mode = #tpu.pipeline_mode<synchronous>, transform_indices = @transform_7, window_bounds = array<i64: 1, 32>}, {pipeline_mode = #tpu.pipeline_mode<synchronous>, transform_indices = @transform_8, window_bounds = array<i64: 1, 32>}, {transform_indices = @transform_9, window_bounds = array<i64: 1, 8, 32>}]} {
    %c0_i32 = arith.constant 0 : i32
    %0 = arith.cmpi eq, %arg2, %c0_i32 : i32
    %c0_i32_0 = arith.constant 0 : i32
    %1 = arith.cmpi eq, %arg3, %c0_i32_0 : i32
    %2 = arith.andi %0, %1 : i1
    %3 = arith.extui %2 : i1 to i32
    %c0_i32_1 = arith.constant 0 : i32
    %4 = arith.cmpi ne, %3, %c0_i32_1 : i32
    scf.if %4 {
      %cst_35 = arith.constant 0.000000e+00 : f32
      %46 = vector.broadcast %cst_35 : f32 to vector<8x32xf32>
      %c0_36 = arith.constant 0 : index
      %c0_37 = arith.constant 0 : index
      %47 = vector.load %arg17[%c0_36, %c0_37] : memref<8x32xf32, #tpu.memory_space<vmem>>, vector<8x32xf32>
      tpu.vector_store %arg17[%c0_36, %c0_37], %46 {strides = array<i32>} : memref<8x32xf32, #tpu.memory_space<vmem>>, vector<8x32xf32>,
    } else {
    }
    %c0_i32_2 = arith.constant 0 : i32
    %5 = arith.cmpi eq, %arg3, %c0_i32_2 : i32
    %6 = arith.extui %5 : i1 to i32
    %c0_i32_3 = arith.constant 0 : i32
    %7 = arith.cmpi ne, %6, %c0_i32_3 : i32
    scf.if %7 {
      %cst_35 = arith.constant 0xFF800000 : f32
      %46 = vector.broadcast %cst_35 : f32 to vector<8x1xf32>
      %c0_36 = arith.constant 0 : index
      %c0_37 = arith.constant 0 : index
      %47 = vector.load %arg14[%c0_36, %c0_37] : memref<8x1xf32, #tpu.memory_space<vmem>>, vector<8x1xf32>
      tpu.vector_store %arg14[%c0_36, %c0_37], %46 {strides = array<i32>} : memref<8x1xf32, #tpu.memory_space<vmem>>, vector<8x1xf32>,
      %cst_38 = arith.constant 0.000000e+00 : f32
      %48 = vector.broadcast %cst_38 : f32 to vector<8x1xf32>
      %c0_39 = arith.constant 0 : index
      %c0_40 = arith.constant 0 : index
      %49 = vector.load %arg15[%c0_39, %c0_40] : memref<8x1xf32, #tpu.memory_space<vmem>>, vector<8x1xf32>
      tpu.vector_store %arg15[%c0_39, %c0_40], %48 {strides = array<i32>} : memref<8x1xf32, #tpu.memory_space<vmem>>, vector<8x1xf32>,
      %cst_41 = arith.constant 0.000000e+00 : f32
      %50 = vector.broadcast %cst_41 : f32 to vector<8x8xf32>
      %c0_42 = arith.constant 0 : index
      %c0_43 = arith.constant 0 : index
      %51 = vector.load %arg16[%c0_42, %c0_43] : memref<8x8xf32, #tpu.memory_space<vmem>>, vector<8x8xf32>
      tpu.vector_store %arg16[%c0_42, %c0_43], %50 {strides = array<i32>} : memref<8x8xf32, #tpu.memory_space<vmem>>, vector<8x8xf32>,
    } else {
    }
    %c0 = arith.constant 0 : index
    %c0_4 = arith.constant 0 : index
    %c0_5 = arith.constant 0 : index
    %c0_6 = arith.constant 0 : index
    %8 = vector.load %arg4[%c0, %c0_4, %c0_5, %c0_6] : memref<1x1x8x8xbf16, #tpu.memory_space<vmem>>, vector<1x1x8x8xbf16>
    %9 = vector.shape_cast %8 : vector<1x1x8x8xbf16> to vector<8x8xbf16>
    %c0_7 = arith.constant 0 : index
    %c0_8 = arith.constant 0 : index
    %c0_9 = arith.constant 0 : index
    %c0_10 = arith.constant 0 : index
    %10 = vector.load %arg5[%c0_7, %c0_8, %c0_9, %c0_10] : memref<1x1x8x8xbf16, #tpu.memory_space<vmem>>, vector<1x1x8x8xbf16>
    %11 = vector.shape_cast %10 : vector<1x1x8x8xbf16> to vector<8x8xbf16>
    %cst = arith.constant dense<0.000000e+00> : vector<8x8xf32>
    %12 = tpu.matmul %9, %11, %cst {dimension_numbers = #tpu.dot_dimension_numbers<[1], [1], [0], [0], [0, 0, 1, 0], [], []>} : vector<8x8xbf16>, vector<8x8xbf16>, vector<8x8xf32> -> vector<8x8xf32>
    %c0_11 = arith.constant 0 : index
    %c0_12 = arith.constant 0 : index
    %c0_13 = arith.constant 0 : index
    %13 = vector.load %arg7[%c0_11, %c0_12, %c0_13] : memref<1x8x8xbf16, #tpu.memory_space<vmem>>, vector<1x8x8xbf16>
    %14 = vector.shape_cast %13 : vector<1x8x8xbf16> to vector<8x8xbf16>
    %15 = arith.extf %14 : vector<8x8xbf16> to vector<8x8xf32>
    %16 = arith.addf %12, %15 : vector<8x8xf32>
    %c0_14 = arith.constant 0 : index
    %c0_15 = arith.constant 0 : index
    %17 = vector.load %arg14[%c0_14, %c0_15] : memref<8x1xf32, #tpu.memory_space<vmem>>, vector<8x1xf32>
    %cst_16 = arith.constant dense<0xFF800000> : vector<8xf32>
    %18 = vector.multi_reduction <maximumf>, %16, %cst_16 [1] : vector<8x8xf32> to vector<8xf32>
    %19 = vector.shape_cast %18 : vector<8xf32> to vector<8x1xf32>
    %20 = arith.maximumf %17, %19 : vector<8x1xf32>
    %21 = arith.subf %17, %20 : vector<8x1xf32>
    %22 = math.exp %21 : vector<8x1xf32>
    %23 = vector.broadcast %20 : vector<8x1xf32> to vector<8x8xf32>
    %24 = arith.subf %16, %23 : vector<8x8xf32>
    %25 = arith.truncf %24 : vector<8x8xf32> to vector<8x8xbf16>
    %26 = math.exp %25 : vector<8x8xbf16>
    %c0_17 = arith.constant 0 : index
    %c0_18 = arith.constant 0 : index
    %27 = vector.load %arg15[%c0_17, %c0_18] : memref<8x1xf32, #tpu.memory_space<vmem>>, vector<8x1xf32>
    %28 = arith.mulf %22, %27 : vector<8x1xf32>
    %29 = arith.extf %26 : vector<8x8xbf16> to vector<8x8xf32>
    %cst_19 = arith.constant dense<0.000000e+00> : vector<8xf32>
    %30 = vector.multi_reduction <add>, %29, %cst_19 [1] : vector<8x8xf32> to vector<8xf32>
    %31 = vector.shape_cast %30 : vector<8xf32> to vector<8x1xf32>
    %32 = arith.addf %28, %31 : vector<8x1xf32>
    %c0_20 = arith.constant 0 : index
    %c0_21 = arith.constant 0 : index
    %33 = vector.load %arg15[%c0_20, %c0_21] : memref<8x1xf32, #tpu.memory_space<vmem>>, vector<8x1xf32>
    tpu.vector_store %arg15[%c0_20, %c0_21], %32 {strides = array<i32>} : memref<8x1xf32, #tpu.memory_space<vmem>>, vector<8x1xf32>,
    %c0_22 = arith.constant 0 : index
    %c0_23 = arith.constant 0 : index
    %34 = vector.load %arg16[%c0_22, %c0_23] : memref<8x8xf32, #tpu.memory_space<vmem>>, vector<8x8xf32>
    %35 = vector.broadcast %22 : vector<8x1xf32> to vector<8x8xf32>
    %36 = arith.mulf %35, %34 : vector<8x8xf32>
    %c0_24 = arith.constant 0 : index
    %c0_25 = arith.constant 0 : index
    %c0_26 = arith.constant 0 : index
    %c0_27 = arith.constant 0 : index
    %37 = vector.load %arg6[%c0_24, %c0_25, %c0_26, %c0_27] : memref<1x1x8x8xbf16, #tpu.memory_space<vmem>>, vector<1x1x8x8xbf16>
    %38 = vector.shape_cast %37 : vector<1x1x8x8xbf16> to vector<8x8xbf16>
    %cst_28 = arith.constant dense<0.000000e+00> : vector<8x8xf32>
    %39 = tpu.matmul %26, %38, %cst_28 {dimension_numbers = #tpu.dot_dimension_numbers<[1], [0], [0], [1], [0, 0, 1, 1], [], []>} : vector<8x8xbf16>, vector<8x8xbf16>, vector<8x8xf32> -> vector<8x8xf32>
    %40 = arith.addf %36, %39 : vector<8x8xf32>
    %c0_29 = arith.constant 0 : index
    %c0_30 = arith.constant 0 : index
    %41 = vector.load %arg16[%c0_29, %c0_30] : memref<8x8xf32, #tpu.memory_space<vmem>>, vector<8x8xf32>
    tpu.vector_store %arg16[%c0_29, %c0_30], %40 {strides = array<i32>} : memref<8x8xf32, #tpu.memory_space<vmem>>, vector<8x8xf32>,
    %c0_31 = arith.constant 0 : index
    %c0_32 = arith.constant 0 : index
    %42 = vector.load %arg14[%c0_31, %c0_32] : memref<8x1xf32, #tpu.memory_space<vmem>>, vector<8x1xf32>
    tpu.vector_store %arg14[%c0_31, %c0_32], %20 {strides = array<i32>} : memref<8x1xf32, #tpu.memory_space<vmem>>, vector<8x1xf32>,
    %c0_i32_33 = arith.constant 0 : i32
    %43 = arith.cmpi eq, %arg3, %c0_i32_33 : i32
    %44 = arith.extui %43 : i1 to i32
    %c0_i32_34 = arith.constant 0 : i32
    %45 = arith.cmpi ne, %44, %c0_i32_34 : i32
    scf.if %45 {
      %c0_35 = arith.constant 0 : index
      %c0_36 = arith.constant 0 : index
      %46 = vector.load %arg15[%c0_35, %c0_36] : memref<8x1xf32, #tpu.memory_space<vmem>>, vector<8x1xf32>
      %47 = tpu.reciprocal %46 {approx = true} : vector<8x1xf32> -> vector<8x1xf32>
      %c0_37 = arith.constant 0 : index
      %c0_38 = arith.constant 0 : index
      %48 = vector.load %arg16[%c0_37, %c0_38] : memref<8x8xf32, #tpu.memory_space<vmem>>, vector<8x8xf32>
      %49 = vector.broadcast %47 : vector<8x1xf32> to vector<8x8xf32>
      %50 = arith.mulf %48, %49 : vector<8x8xf32>
      %51 = arith.truncf %50 : vector<8x8xf32> to vector<8x8xbf16>
      %c0_39 = arith.constant 0 : index
      %c0_40 = arith.constant 0 : index
      %52 = vector.load %arg17[%c0_39, %c0_40] : memref<8x32xf32, #tpu.memory_space<vmem>>, vector<8x32xf32>
      %c0_41 = arith.constant 0 : index
      %c0_42 = arith.constant 0 : index
      %c0_43 = arith.constant 0 : index
      %53 = vector.load %arg8[%c0_41, %c0_42, %c0_43] : memref<1x8x32xbf16, #tpu.memory_space<vmem>>, vector<1x8x32xbf16>
      %54 = vector.shape_cast %53 : vector<1x8x32xbf16> to vector<8x32xbf16>
      %cst_44 = arith.constant dense<0.000000e+00> : vector<8x32xf32>
      %55 = tpu.matmul %51, %54, %cst_44 {dimension_numbers = #tpu.dot_dimension_numbers<[1], [0], [0], [1], [0, 0, 1, 1], [], []>} : vector<8x8xbf16>, vector<8x32xbf16>, vector<8x32xf32> -> vector<8x32xf32>
      %56 = arith.addf %52, %55 : vector<8x32xf32>
      %c0_45 = arith.constant 0 : index
      %c0_46 = arith.constant 0 : index
      %57 = vector.load %arg17[%c0_45, %c0_46] : memref<8x32xf32, #tpu.memory_space<vmem>>, vector<8x32xf32>
      tpu.vector_store %arg17[%c0_45, %c0_46], %56 {strides = array<i32>} : memref<8x32xf32, #tpu.memory_space<vmem>>, vector<8x32xf32>,
      %c3_i32 = arith.constant 3 : i32
      %58 = arith.cmpi eq, %arg2, %c3_i32 : i32
      %59 = arith.extui %58 : i1 to i32
      %c0_i32_47 = arith.constant 0 : i32
      %60 = arith.cmpi ne, %59, %c0_i32_47 : i32
      scf.if %60 {
        %c0_48 = arith.constant 0 : index
        %c0_49 = arith.constant 0 : index
        %61 = vector.load %arg17[%c0_48, %c0_49] : memref<8x32xf32, #tpu.memory_space<vmem>>, vector<8x32xf32>
        %c0_50 = arith.constant 0 : index
        %c0_51 = arith.constant 0 : index
        %62 = vector.load %arg10[%c0_50, %c0_51] : memref<1x32xf32, #tpu.memory_space<vmem>>, vector<1x32xf32>
        %63 = vector.broadcast %62 : vector<1x32xf32> to vector<8x32xf32>
        %64 = arith.addf %61, %63 : vector<8x32xf32>
        %c0_52 = arith.constant 0 : index
        %c0_53 = arith.constant 0 : index
        %c0_54 = arith.constant 0 : index
        %65 = vector.load %arg9[%c0_52, %c0_53, %c0_54] : memref<1x8x32xf32, #tpu.memory_space<vmem>>, vector<1x8x32xf32>
        %66 = vector.shape_cast %65 : vector<1x8x32xf32> to vector<8x32xf32>
        %67 = arith.addf %64, %66 : vector<8x32xf32>
        %cst_55 = arith.constant dense<0.000000e+00> : vector<8xf32>
        %68 = vector.multi_reduction <add>, %67, %cst_55 [1] : vector<8x32xf32> to vector<8xf32>
        %69 = vector.shape_cast %68 : vector<8xf32> to vector<8x1xf32>
        %cst_56 = arith.constant 3.200000e+01 : f32
        %70 = vector.broadcast %cst_56 : f32 to vector<8x1xf32>
        %71 = arith.divf %69, %70 : vector<8x1xf32>
        %72 = arith.mulf %67, %67 : vector<8x32xf32>
        %cst_57 = arith.constant dense<0.000000e+00> : vector<8xf32>
        %73 = vector.multi_reduction <add>, %72, %cst_57 [1] : vector<8x32xf32> to vector<8xf32>
        %74 = vector.shape_cast %73 : vector<8xf32> to vector<8x1xf32>
        %cst_58 = arith.constant 3.200000e+01 : f32
        %75 = vector.broadcast %cst_58 : f32 to vector<8x1xf32>
        %76 = arith.divf %74, %75 : vector<8x1xf32>
        %77 = arith.mulf %71, %71 : vector<8x1xf32>
        %78 = arith.subf %76, %77 : vector<8x1xf32>
        %cst_59 = arith.constant 0.000000e+00 : f32
        %79 = vector.broadcast %cst_59 : f32 to vector<8x1xf32>
        %80 = arith.maximumf %78, %79 : vector<8x1xf32>
        %81 = vector.broadcast %71 : vector<8x1xf32> to vector<8x32xf32>
        %82 = arith.subf %67, %81 : vector<8x32xf32>
        %cst_60 = arith.constant 9.99999996E-13 : f32
        %83 = vector.broadcast %cst_60 : f32 to vector<8x1xf32>
        %84 = arith.addf %80, %83 : vector<8x1xf32>
        %85 = math.rsqrt %84 : vector<8x1xf32>
        %86 = vector.broadcast %85 : vector<8x1xf32> to vector<8x32xf32>
        %87 = arith.mulf %82, %86 : vector<8x32xf32>
        %c0_61 = arith.constant 0 : index
        %c0_62 = arith.constant 0 : index
        %88 = vector.load %arg11[%c0_61, %c0_62] : memref<1x32xf32, #tpu.memory_space<vmem>>, vector<1x32xf32>
        %89 = vector.broadcast %88 : vector<1x32xf32> to vector<8x32xf32>
        %90 = arith.mulf %87, %89 : vector<8x32xf32>
        %c0_63 = arith.constant 0 : index
        %c0_64 = arith.constant 0 : index
        %91 = vector.load %arg12[%c0_63, %c0_64] : memref<1x32xf32, #tpu.memory_space<vmem>>, vector<1x32xf32>
        %92 = vector.broadcast %91 : vector<1x32xf32> to vector<8x32xf32>
        %93 = arith.addf %90, %92 : vector<8x32xf32>
        %c0_65 = arith.constant 0 : index
        %c0_66 = arith.constant 0 : index
        %c0_67 = arith.constant 0 : index
        %94 = vector.load %arg13[%c0_65, %c0_66, %c0_67] : memref<1x8x32xf32, #tpu.memory_space<vmem>>, vector<1x8x32xf32>
        %95 = vector.shape_cast %94 : vector<1x8x32xf32> to vector<8x32xf32>
        %96 = vector.shape_cast %93 : vector<8x32xf32> to vector<1x8x32xf32>
        tpu.vector_store %arg13[%c0_65, %c0_66, %c0_67], %96 {strides = array<i32>} : memref<1x8x32xf32, #tpu.memory_space<vmem>>, vector<1x8x32xf32>,
      } else {
      }
    } else {
    }
    return
  }
  func.func @transform_0(%arg0: i32, %arg1: i32, %arg2: i32, %arg3: i32) -> (i32, i32, i32, i32) {
    %c0_i32 = arith.constant 0 : i32
    %c0_i32_0 = arith.constant 0 : i32
    return %arg0, %arg2, %arg1, %c0_i32 : i32, i32, i32, i32
  }
  func.func @transform_1(%arg0: i32, %arg1: i32, %arg2: i32, %arg3: i32) -> (i32, i32, i32, i32) {
    %c0_i32 = arith.constant 0 : i32
    %c0_i32_0 = arith.constant 0 : i32
    return %arg0, %arg2, %arg3, %c0_i32 : i32, i32, i32, i32
  }
  func.func @transform_2(%arg0: i32, %arg1: i32, %arg2: i32, %arg3: i32) -> (i32, i32, i32, i32) {
    %c0_i32 = arith.constant 0 : i32
    %c0_i32_0 = arith.constant 0 : i32
    return %arg0, %arg2, %arg3, %c0_i32 : i32, i32, i32, i32
  }
  func.func @transform_3(%arg0: i32, %arg1: i32, %arg2: i32, %arg3: i32) -> (i32, i32, i32) {
    %c0_i32 = arith.constant 0 : i32
    return %arg0, %arg1, %arg3 : i32, i32, i32
  }
  func.func @transform_4(%arg0: i32, %arg1: i32, %arg2: i32, %arg3: i32) -> (i32, i32, i32) {
    %c0_i32 = arith.constant 0 : i32
    %c0_i32_0 = arith.constant 0 : i32
    %c0_i32_1 = arith.constant 0 : i32
    return %arg2, %c0_i32, %c0_i32_0 : i32, i32, i32
  }
  func.func @transform_5(%arg0: i32, %arg1: i32, %arg2: i32, %arg3: i32) -> (i32, i32, i32) {
    %c0_i32 = arith.constant 0 : i32
    %c0_i32_0 = arith.constant 0 : i32
    return %arg0, %arg1, %c0_i32 : i32, i32, i32
  }
  func.func @transform_6(%arg0: i32, %arg1: i32, %arg2: i32, %arg3: i32) -> (i32, i32) {
    %c0_i32 = arith.constant 0 : i32
    %c0_i32_0 = arith.constant 0 : i32
    %c0_i32_1 = arith.constant 0 : i32
    return %c0_i32, %c0_i32_0 : i32, i32
  }
  func.func @transform_7(%arg0: i32, %arg1: i32, %arg2: i32, %arg3: i32) -> (i32, i32) {
    %c0_i32 = arith.constant 0 : i32
    %c0_i32_0 = arith.constant 0 : i32
    %c0_i32_1 = arith.constant 0 : i32
    return %c0_i32, %c0_i32_0 : i32, i32
  }
  func.func @transform_8(%arg0: i32, %arg1: i32, %arg2: i32, %arg3: i32) -> (i32, i32) {
    %c0_i32 = arith.constant 0 : i32
    %c0_i32_0 = arith.constant 0 : i32
    %c0_i32_1 = arith.constant 0 : i32
    return %c0_i32, %c0_i32_0 : i32, i32
  }
  func.func @transform_9(%arg0: i32, %arg1: i32, %arg2: i32, %arg3: i32) -> (i32, i32, i32) {
    %c0_i32 = arith.constant 0 : i32
    %c0_i32_0 = arith.constant 0 : i32
    return %arg0, %arg1, %c0_i32 : i32, i32, i32
  }
}

</mosaic_0001>

<bundles_post_ra>
// kernel: tpu_custom_call.1
= control target key start
LH: loop header
LB: loop body
LE: loop exit
PB: predicated region body
PF: predicated region fallthrough
CT: control target
= control target key end

     0   :  { %s2128_s0 = inlined_call_operand.hbm [shape: bf16[2,4,8,8], index: 0, kind: input, shape index: {}]   ;;  %s2129_s1 = inlined_call_operand.hbm [shape: bf16[2,4,8,8], index: 1, kind: input, shape index: {}]   ;;  %s2130_s2 = inlined_call_operand.hbm [shape: bf16[2,4,8,8], index: 2, kind: input, shape index: {}]   ;;  %s2131_s3 = inlined_call_operand.hbm [shape: bf16[2,8,8], index: 3, kind: input, shape index: {}]   ;;  %s2132_s4 = inlined_call_operand.hbm [shape: bf16[4,8,32], index: 4, kind: input, shape index: {}]   ;;  %s2133_s5 = inlined_call_operand.hbm [shape: f32[2,8,32], index: 5, kind: input, shape index: {}]   ;;  %s2134_s6 = inlined_call_operand.vmem [shape: f32[1,32], index: 6, kind: input, shape index: {}]   ;;  %s2135_s7 = inlined_call_operand.vmem [shape: f32[1,32], index: 7, kind: input, shape index: {}]   ;;  %s2136_s8 = inlined_call_operand.vmem [shape: f32[1,32], index: 8, kind: input, shape index: {}]   ;;  %s2137_s9 = inlined_call_operand.hbm [shape: f32[2,8,32], index: 9, kind: output, shape index: {}]  }
   0x1   :  { %2163 = sst [smem:[#allocation40_spill]] %s2129_s1 }
   0x2   :  { %2164 = sst [smem:[#allocation41_spill]] %s2131_s3 }
   0x3   :  { %2165 = sst [smem:[#allocation42_spill]] %s2133_s5 }
   0x4   :  { %2166 = sst [smem:[#allocation43_spill]] %s2134_s6 }
   0x5   :  { %2167 = sst [smem:[#allocation44_spill]] %s2135_s7 }
   0x6   :  { %2168 = sst [smem:[#allocation45_spill]] %s2136_s8 }
   0x7   :  { %2169 = sst [smem:[#allocation46_spill]] %s2137_s9 }
   0x8   :  { %14 = vsyncpa [#allocation7], 0 }
   0x9   :  { %16 = vsyncpa [#allocation7 + $0x1], 0 }
   0xa   :  { %17 = vsyncpa [#allocation10], 0 }
   0xb   :  { %19 = vsyncpa [#allocation10 + $0x1], 0 }
   0xc   :  { %20 = vsyncpa [#allocation13], 0 }
   0xd   :  { %22 = vsyncpa [#allocation13 + $0x1], 0 }
   0xe   :  { %23 = vsyncpa [#allocation16], 0 }
   0xf   :  { %25 = vsyncpa [#allocation16 + $0x1], 0 }
  0x10   :  { %26 = vsyncpa [#allocation8], 0 }
  0x11   :  { %28 = vsyncpa [#allocation8 + $0x1], 0  ;;  %s1697_s30 = smov 0   ;;  %s1699_s10 = smov 0  }
  0x12   :  { %s1701_s11 = smov 0   ;;  %s1703_s12 = smov 0  }
  0x13   :  { %s1705_s13 = smov 0   ;;  %s1707_s14 = smov 0  }
  0x14   :  { %s1709_s15 = smov 0   ;;  %s1711_s16 = smov 0  }
  0x15   :  { %s1713_s17 = smov 0   ;;  %s1715_s18 = smov 0  }
  0x16   :  { %s1717_s19 = smov 0   ;;  %s1719_s20 = smov 0  }
  0x17   :  { %s1721_s21 = smov 0   ;;  %s1723_s22 = smov 0  }
  0x18 LB: > { %2170 = sst [smem:[#allocation24_spill]] %s1593_s12  ;;  %s1766_s23 = sadd.s32 4294967295, %s1633_s22   ;;  %s1633_s22 = sphi %s1723_s22, %s34_s22   ;;  %s1629_s21 = sphi %s1721_s21, %s2242_s21   ;;  %s1625_s20 = sphi %s1719_s20, %s2241_s20   ;;  %s1621_s19 = sphi %s1717_s19, %s2240_s19   ;;  %s1617_s18 = sphi %s1715_s18, %s2239_s18   ;;  %s1613_s17 = sphi %s1713_s17, %s2238_s17   ;;  %s1609_s16 = sphi %s1711_s16, %s2237_s16   ;;  %s1605_s15 = sphi %s1709_s15, %s2230_s15   ;;  %s1601_s14 = sphi %s1707_s14, %s2229_s14   ;;  %s1597_s13 = sphi %s1705_s13, %s2228_s13   ;;  %s1593_s12 = sphi %s1703_s12, %s2227_s12   ;;  %s1589_s11 = sphi %s1701_s11, %s2236_s11   ;;  %s1585_s10 = sphi %s1699_s10, %s2235_s10   ;;  %s1581_s30 = sphi %s1697_s30, %s2234_s30  }
  0x19   : > { %2171 = sst [smem:[#allocation25_spill]] %s1597_s13  ;;  %s52_s24 = sadd.s32 1, %s1625_s20 }
  0x1a   : > { %2172 = sst [smem:[#allocation26_spill]] %s1601_s14  ;;  %p54_p0 = scmp.ge.s32.totalorder %s52_s24, 4 }
  0x1b   : > { %2173 = sst [smem:[#allocation27_spill]] %s1609_s16  ;;  %s60_s25 = sadd.s32 1, %s1629_s21 }
  0x1c   : > { %2174 = sst [smem:[#allocation28_spill]] %s1617_s18  ;;  %s71_s26 = sadd.s32 1, %s1613_s17 }
  0x1d   : > { %2175 = sst [smem:[#allocation29_spill]] %s1621_s19  ;;  %p78_p1 = scmp.ne.s32.totalorder %s1613_s17, %s1609_s16 }
  0x1e   : > { %s2244_s24 = smov (%p54_p0, %s52_s24), 0  ;;  %s2246_s25 = smov (!%p54_p0, %s60_s25), %s1629_s21 }
  0x1f   : > { %2176 = sst [smem:[#allocation30_spill]] %s2244_s24  ;;  %s1778_s27 = ssub.s32 %s1625_s20, %s2244_s24 }
  0x20   : > { %p2156_p2 = scmp.eq.s32.totalorder %s1633_s22, 0  ;;  %p62_p3 = scmp.ge.s32.totalorder %s2246_s25, 2 }
  0x21   : > { %p84_p4 = scmp.ne.s32.totalorder %s1609_s16, %s1605_s15  ;;  %p2155_p6 = scmp.eq.s32.totalorder %s1766_s23, 0 }
  0x22   : > { %p1784_p5 = por %p2156_p2, %p78_p1  ;;  %s2248_s25 = smov (%p62_p3, %s2246_s25), 0 }
  0x23   : > { %2178 = sst [smem:[#allocation31_spill]] %s2248_s25  ;;  %p1793_p7 = por %p2155_p6, %p84_p4 }
  0x24   : > { %s1800_s24 = ssub.s32 %s1629_s21, %s2248_s25  ;;  %p2145_p11 = scmp.lt.s32.totalorder %s1633_s22, 8 }
  0x25   : > { %s2179_s29 = scalar_select %p1793_p7, 1, 0 }
  0x26   : > { %s66_s15 = sor.u32 %s1778_s27, %s1800_s24  ;;  %p159_p9 = scmp.eq.s32.totalorder %s1800_s24, 0 }
  0x27   : > { %2180 = sst [smem:[#allocation32_spill]] %s2179_s29  ;;  %p69_p10 = scmp.eq.s32.totalorder %s66_s15, 0 }
  0x28   : > { %s2143_s9 = sand.u32 1, %s1613_s17   ;;  %s1080_s19 = sshll.u32 %s1629_s21, 2 }
  0x29   : > { %s1809_s8 = scalar_select %p69_p10, %s1613_s17, %s71_s26  }
  0x2a   : > { %s1813_s7 = sshll.u32 %s2143_s9, 2  ;;  %s362_s6 = sadd.s32 %s1625_s20, %s1080_s19 }
  0x2b   : > { %2181 = sst [smem:[#allocation33_spill]] %s1809_s8  ;;  %s1816_s18 = sshll.u32 %s362_s6, 6 }
  0x2c   : > { %p1822_p12 = pnand %p2145_p11, %p1784_p5  ;;  %s2147_s15 = sand.u32 1, %s1633_s22  }
  0x2d   : > { %s2183_s1 = sld [smem:[#allocation40_spill]]  ;;  %s377_s9 = scalar_lea.vmem [#allocation9], %s1813_s7 }
  0x2e   : > { %s387_s16 = sshll.u32 %s377_s9, 4  ;;  %p1094_p13 = scmp.ge.s32.totalorder %s1633_s22, 1  ;;  %s388_s16 = int_to_ptr.vmem [resolvable:$true] %s387_s16 }
  0x2f   : > { %s1835_s6 = scalar_lea.sflag [#allocation10], %s2147_s15  ;;  %p2146_p0 = pneg %p1822_p12 }
  0x30   : > { %s1318_s19 = scalar_lea.vmem %s388_s16, 64  ;;  %s1635_s28 = smov [#allocation9]  }
  0x31   : > { %p1319_p1 = scmp.ne.s32.totalorder %s388_s16, %s1318_s19  ;;  %s1323_s5 = sshll.u32 %s1635_s28, 4  ;;  %s1324_s5 = int_to_ptr.vmem [resolvable:$false] %s1323_s5 }
  0x32   : > { %s1325_s29 = scalar_lea.vmem %s1324_s5, 128  ;;  %p1326_p5 = scmp.lt.s32.totalorder %s388_s16, %s1324_s5 }
  0x33   : > { %s385_s8 = scalar_lea.hbm %s2183_s1, %s1816_s18  ;;  %p1321_p3 = pnand %p1319_p1, %p2146_p0 }
  0x34   : > { %p1327_p10 = scmp.lt.s32.totalorder %s1325_s29, %s1318_s19 }
  0x35   : > { %p1322_p4 = pneg %p1321_p3 }
  0x36   : > { %p1328_p8 = por %p1327_p10, %p1326_p5 }
  0x38   : > { %p1329_p11 = pnand %p1328_p8, %p1322_p4 }
  0x3a   : > { %1332 = shalt.err (!%p1329_p11)
}
  0x3b   : > { %1159 = dma.hbm_to_vmem [thread:$0]  (!%p1822_p12), %s385_s8, 64, %s388_s16, %s1835_s6  }
  0x3c   : > { %p470_p8 = scmp.lt.s32.totalorder %s1633_s22, 9  ;;  %s1076_s9 = sadd.s32 4294967294, %s1633_s22  }
  0x3d   : > { %s161_s26 = sadd.s32 1, %s1601_s14  ;;  %p168_p1 = scmp.ne.s32.totalorder %s1601_s14, %s1597_s13 }
  0x3e   : > { %p1848_p11 = pnand %p1094_p13, %p470_p8  ;;  %p174_p3 = scmp.ne.s32.totalorder %s1597_s13, %s1593_s12 }
  0x3f   : > { %s1857_s19 = scalar_select %p159_p9, %s1601_s14, %s161_s26  }
  0x40   : > { %s2184_s5 = scalar_select %p1848_p11, 1, 0 }
  0x41   : > { %2186 = sst [smem:[#allocation35_spill]] %s1857_s19  ;;  %p317_p4 = scmp.eq.s32.totalorder %s1766_s23, 7 }
  0x42   : > { %2185 = sst [smem:[#allocation34_spill]] %s2184_s5  ;;  %p323_p5 = scmp.eq.s32.totalorder %s1076_s9, 7 }
  0x43   : > { %p170_p10 = por %p168_p1, %p2156_p2  ;;  %p1868_p0 = por %p174_p3, %p2155_p6 }
  0x44   : > { %p1872_p13 = por %p317_p4, %p168_p1  ;;  %p1876_p8 = por %p323_p5, %p174_p3 }
  0x45   : > { %s2187_s8 = scalar_select %p1868_p0, 1, 0 }
  0x46   : > { %s2189_s16 = scalar_select %p1872_p13, 1, 0 }
  0x47   : > { %2188 = sst [smem:[#allocation36_spill]] %s2187_s8  ;;  %s1881_s28 = sand.u32 1, %s1601_s14  }
  0x48   : > { %2190 = sst [smem:[#allocation37_spill]] %s2189_s16  ;;  %s1088_s29 = sshll.u32 %s1881_s28, 2 }
  0x49   : > { %s2191_s24 = scalar_select %p1876_p8, 1, 0 }
  0x4a   : > { %s1089_s9 = sshll.u32 %s1629_s21, 6  ;;  %s2193_s3 = sld [smem:[#allocation41_spill]] }
  0x4b   : > { %2192 = sst [smem:[#allocation38_spill]] %s2191_s24  ;;  %s419_s19 = scalar_lea.vmem [#allocation12], %s1088_s29 }
  0x4c   : > { %s428_s12 = sshll.u32 %s419_s19, 4  ;;  %p2194_p9 = scmp.lt.s32.totalorder %s1633_s22, 8  ;;  %s429_s12 = int_to_ptr.vmem [resolvable:$true] %s428_s12 }
  0x4d   : > { %s2197_s24 = sand.u32 1, %s1633_s22   ;;  %s1346_s16 = scalar_lea.vmem %s429_s12, 64 }
  0x4e   : > { %p1890_p1 = pnand %p2194_p9, %p170_p10  ;;  %s1896_s14 = scalar_lea.sflag [#allocation13], %s2197_s24 }
  0x4f   : > { %p1347_p4 = scmp.ne.s32.totalorder %s429_s12, %s1346_s16  ;;  %s1636_s15 = smov [#allocation12]  }
  0x50   : > { %s426_s1 = scalar_lea.hbm %s2193_s3, %s1089_s9  ;;  %p2161_p3 = pneg %p1890_p1 }
  0x51   : > { %s2195_s8 = scalar_select %p1890_p1, 1, 0 }
  0x52   : > { %p1349_p5 = pnand %p1347_p4, %p2161_p3  ;;  %s1351_s19 = sshll.u32 %s1636_s15, 4  ;;  %s1352_s19 = int_to_ptr.vmem [resolvable:$false] %s1351_s19 }
  0x53   : > { %2196 = sst [smem:[#allocation39_spill]] %s2195_s8  ;;  %s1353_s29 = scalar_lea.vmem %s1352_s19, 128 }
  0x54   : > { %p1350_p6 = pneg %p1349_p5  ;;  %p1354_p10 = scmp.lt.s32.totalorder %s429_s12, %s1352_s19 }
  0x55   : > { %p1355_p9 = scmp.lt.s32.totalorder %s1353_s29, %s1346_s16 }
  0x57   : > { %p1356_p2 = por %p1355_p9, %p1354_p10 }
  0x59   : > { %p1357_p8 = pnand %p1356_p2, %p1350_p6 }
  0x5b   : > { %1360 = shalt.err (!%p1357_p8)
}
  0x5c   : > { %1165 = dma.hbm_to_vmem [thread:$0]  (!%p1890_p1), %s426_s1, 64, %s429_s12, %s1896_s14  }
  0x5d   : > { %s364_s26 = scalar_lea.hbm %s2128_s0, %s1816_s18  ;;  %s356_s15 = scalar_lea.vmem [#allocation6], %s1813_s7 }
  0x5e   : > { %s366_s3 = sshll.u32 %s356_s15, 4  ;;  %s2198_s19 = sand.u32 1, %s1613_s17   ;;  %s367_s3 = int_to_ptr.vmem [resolvable:$true] %s366_s3 }
  0x5f   : > { %s353_s16 = scalar_lea.sflag [#allocation7], %s2198_s19  ;;  %s1374_s29 = scalar_lea.vmem %s367_s3, 64 }
  0x60   : > { %p1375_p2 = scmp.ne.s32.totalorder %s367_s3, %s1374_s29  ;;  %p2199_p6 = pneg %p1822_p12 }
  0x61   : > { %s1637_s13 = smov [#allocation6]  }
  0x62   : > { %p1377_p8 = pnand %p1375_p2, %p2199_p6  ;;  %s1379_s5 = sshll.u32 %s1637_s13, 4  ;;  %s1380_s5 = int_to_ptr.vmem [resolvable:$false] %s1379_s5 }
  0x63   : > { %s1381_s8 = scalar_lea.vmem %s1380_s5, 128  ;;  %p1382_p5 = scmp.lt.s32.totalorder %s367_s3, %s1380_s5 }
  0x64   : > { %p1378_p4 = pneg %p1377_p8  ;;  %p1383_p10 = scmp.lt.s32.totalorder %s1381_s8, %s1374_s29 }
  0x66   : > { %p1384_p9 = por %p1383_p10, %p1382_p5 }
  0x68   : > { %p1385_p3 = pnand %p1384_p9, %p1378_p4 }
  0x6a   : > { %1388 = shalt.err (!%p1385_p3)
}
  0x6b   : > { %1156 = dma.hbm_to_vmem [thread:$0]  (!%p1822_p12), %s364_s26, 64, %s367_s3, %s353_s16  }
  0x6c   : > { %s406_s24 = scalar_lea.hbm %s2130_s2, %s1816_s18  ;;  %s398_s9 = scalar_lea.vmem [#allocation11], %s1813_s7 }
  0x6d   : > { %s408_s15 = sshll.u32 %s398_s9, 4  ;;  %s1638_s5 = smov [#allocation11]   ;;  %s409_s15 = int_to_ptr.vmem [resolvable:$true] %s408_s15 }
  0x6e   : > { %s1402_s13 = scalar_lea.vmem %s409_s15, 64  ;;  %s1407_s8 = sshll.u32 %s1638_s5, 4  ;;  %s1408_s8 = int_to_ptr.vmem [resolvable:$false] %s1407_s8 }
  0x6f   : > { %p1403_p2 = scmp.ne.s32.totalorder %s409_s15, %s1402_s13  ;;  %s1409_s19 = scalar_lea.vmem %s1408_s8, 128 }
  0x70   : > { %p1410_p3 = scmp.lt.s32.totalorder %s409_s15, %s1408_s8  ;;  %p1411_p5 = scmp.lt.s32.totalorder %s1409_s19, %s1402_s13 }
  0x71   : > { %p1405_p8 = pnand %p1403_p2, %p2199_p6 }
  0x72   : > { %p1412_p10 = por %p1411_p5, %p1410_p3 }
  0x73   : > { %p1406_p4 = pneg %p1405_p8 }
  0x75   : > { %p1413_p9 = pnand %p1412_p10, %p1406_p4 }
  0x77   : > { %1416 = shalt.err (!%p1413_p9)
}
  0x78   : > { %1162 = dma.hbm_to_vmem [thread:$0]  (!%p1822_p12), %s406_s24, 64, %s409_s15, %s1835_s6  }
  0x79   : > { %s187_s3 = sadd.s32 1, %s1589_s11  ;;  %p2200_p2 = scmp.eq.s32.totalorder %s1778_s27, 0 }
  0x7a   : > { %p194_p6 = scmp.ne.s32.totalorder %s1589_s11, %s1585_s10  ;;  %p200_p8 = scmp.ne.s32.totalorder %s1585_s10, %s1581_s30 }
  0x7b   : > { %s1933_s7 = scalar_select %p2200_p2, %s1589_s11, %s187_s3  }
  0x7c   : > { %s437_s18 = sand.u32 1, %s1589_s11   ;;  %s1091_s25 = sshll.u32 %s1625_s20, 6 }
  0x7d   : > { %p2201_p4 = scmp.eq.s32.totalorder %s1633_s22, 0  ;;  %p2202_p5 = scmp.eq.s32.totalorder %s1766_s23, 0 }
  0x7e   : > { %s1090_s16 = sshll.u32 %s437_s18, 2  ;;  %s444_s6 = scalar_lea.hbm %s2132_s4, %s1091_s25 }
  0x7f   : > { %p196_p3 = por %p194_p6, %p2201_p4  ;;  %p1945_p10 = por %p200_p8, %p2202_p5 }
  0x80   : > { %p2204_p12 = scmp.lt.s32.totalorder %s1633_s22, 8  ;;  %s439_s30 = scalar_lea.vmem [#allocation14], %s1090_s16 }
  0x81   : > { %s446_s12 = sshll.u32 %s439_s30, 4  ;;  %s1639_s9 = smov [#allocation14]   ;;  %s447_s12 = int_to_ptr.vmem [resolvable:$true] %s446_s12 }
  0x82   : > { %p1954_p9 = pnand %p2204_p12, %p196_p3  ;;  %s1430_s24 = scalar_lea.vmem %s447_s12, 64 }
  0x83   : > { %p1431_p6 = scmp.ne.s32.totalorder %s447_s12, %s1430_s24  ;;  %s1435_s15 = sshll.u32 %s1639_s9, 4  ;;  %s1436_s15 = int_to_ptr.vmem [resolvable:$false] %s1435_s15 }
  0x84   : > { %p1419_p2 = pneg %p1954_p9  ;;  %s1437_s13 = scalar_lea.vmem %s1436_s15, 128 }
  0x85   : > { %p1438_p5 = scmp.lt.s32.totalorder %s447_s12, %s1436_s15  ;;  %p1439_p13 = scmp.lt.s32.totalorder %s1437_s13, %s1430_s24 }
  0x86   : > { %p1433_p8 = pnand %p1431_p6, %p1419_p2 }
  0x87   : > { %p1440_p3 = por %p1439_p13, %p1438_p5 }
  0x88   : > { %p1434_p4 = pneg %p1433_p8 }
  0x8a   : > { %p1441_p12 = pnand %p1440_p3, %p1434_p4 }
  0x8c   : > { %1444 = shalt.err (!%p1441_p12)
}
  0x8d   : > { %1168 = dma.hbm_to_vmem [thread:$0]  (!%p1954_p9), %s444_s6, 64, %s447_s12, %s1896_s14  }
  0x8e   : > { %s1092_s8 = sshll.u32 %s1881_s28, 3  ;;  %s1093_s19 = sshll.u32 %s1629_s21, 7 }
  0x8f   : > { %s2207_s25 = sld [smem:[#allocation42_spill]]  ;;  %s457_s29 = scalar_lea.vmem [#allocation15], %s1092_s8 }
  0x90   : > { %s465_s1 = sshll.u32 %s457_s29, 4  ;;  %s454_s30 = scalar_lea.sflag [#allocation16], %s1881_s28  ;;  %s466_s1 = int_to_ptr.vmem [resolvable:$true] %s465_s1 }
  0x91   : > { %s1458_s24 = scalar_lea.vmem %s466_s1, 128  ;;  %p2208_p2 = pneg %p1890_p1 }
  0x92   : > { %p1459_p13 = scmp.ne.s32.totalorder %s466_s1, %s1458_s24  ;;  %s1640_s27 = smov [#allocation15]  }
  0x93   : > { %s1463_s9 = sshll.u32 %s1640_s27, 4  ;;  %s1464_s9 = int_to_ptr.vmem [resolvable:$false] %s1463_s9 }
  0x94   : > { %p1461_p6 = pnand %p1459_p13, %p2208_p2  ;;  %s1465_s14 = scalar_lea.vmem %s1464_s9, 256 }
  0x95   : > { %s463_s16 = scalar_lea.hbm %s2207_s25, %s1093_s19  ;;  %p1466_p9 = scmp.lt.s32.totalorder %s466_s1, %s1464_s9 }
  0x96   : > { %p1462_p8 = pneg %p1461_p6  ;;  %p1467_p4 = scmp.lt.s32.totalorder %s1465_s14, %s1458_s24 }
  0x98   : > { %p1468_p5 = por %p1467_p4, %p1466_p9 }
  0x9a   : > { %p1469_p3 = pnand %p1468_p5, %p1462_p8 }
  0x9c   : > { %1472 = shalt.err (!%p1469_p3)
}
  0x9d   : > { %1171 = dma.hbm_to_vmem [thread:$0]  (!%p1890_p1), %s463_s16, 128, %s466_s1, %s454_s30  }
  0x9e   : > { %474 = sbr.rel (%p1848_p11) target bundleno = 1390 (0x56e), region = 56  ;;  %s2210_s28 = sld [smem:[#allocation27_spill]] (!%p1848_p11) }
  0xa4   : > { %s476_s15 = sand.u32 1, %s2210_s28  }
  0xa5   : > { %s1977_s13 = sshll.u32 %s476_s15, 2  ;;  %s477_s8 = scalar_lea.sflag [#allocation7], %s476_s15 }
  0xa6   : > { %s480_s19 = scalar_lea.vmem [#allocation6], %s1977_s13 }
  0xa7   : > { %1556 = dma.done.wait (%p1793_p7), %s477_s8, 64  }
  0xa8   : > { %1558 = vsyncadd (%p1793_p7), %s477_s8, 4294967232  ;;  %s485_s5 = sand.u32 1, %s1766_s23   ;;  %s489_s18 = scalar_lea.vmem [#allocation9], %s1977_s13 }
  0xa9   : > { %s486_s3 = scalar_lea.sflag [#allocation10], %s485_s5 }
  0xaa   : > { %1560 = dma.done.wait (%p1793_p7), %s486_s3, 128  }
  0xab   : > { %1562 = vsyncadd (%p1793_p7), %s486_s3, 4294967168  ;;  %s2212_s25 = sld [smem:[#allocation25_spill]]  ;;  %s498_s30 = scalar_lea.vmem [#allocation11], %s1977_s13 }
  0xac   : > { %s504_s24 = scalar_lea.sflag [#allocation13], %s485_s5 }
  0xb1   : > { %s1991_s29 = sand.u32 1, %s2212_s25  }
  0xb2   : > { %s1098_s1 = sshll.u32 %s1991_s29, 2 }
  0xb3   : > { %s1995_s27 = scalar_lea.vmem [#allocation12], %s1098_s1 }
  0xb4   : > { %1564 = dma.done.wait (%p1868_p0), %s504_s24, 64  }
  0xb5   : > { %1566 = vsyncadd (%p1868_p0), %s504_s24, 4294967232  ;;  %s514_s23 = sand.u32 1, %s1585_s10  }
  0xb6   : > { %s2002_s9 = sshll.u32 %s514_s23, 2 }
  0xb7   : > { %s516_s14 = scalar_lea.vmem [#allocation14], %s2002_s9 }
  0xb8   : > { %1568 = dma.done.wait (%p1945_p10), %s504_s24, 64  }
  0xb9   : > { %1570 = vsyncadd (%p1945_p10), %s504_s24, 4294967232  ;;  %s1100_s6 = sshll.u32 %s1991_s29, 3  ;;  %s522_s28 = scalar_lea.sflag [#allocation16], %s1991_s29 }
  0xba   : > { %s2011_s12 = scalar_lea.vmem [#allocation15], %s1100_s6 }
  0xbb   : > { %1572 = dma.done.wait (%p1868_p0), %s522_s28, 128  }
  0xbc   : > { %1574 = vsyncadd (%p1868_p0), %s522_s28, 4294967168  ;;  %s2214_s15 = sld [smem:[#allocation28_spill]]  ;;  %s2018_s8 = scalar_lea.vmem [#allocation17], %s1100_s6 }
  0xc2   : > { %p586_p7 = scmp.eq.s32.totalorder %s2214_s15, 0 }
  0xc3   : > { %vm592_vm0 = vcmask (%p586_p7), 261120   ;;  %v1641_v0 = vmov (%p586_p7), 0.0  }
  0xc4   : > { %591 = sbr.rel (!%p586_p7) target bundleno = 201 (0xc9), region = 84  ;;  %593 = vst.msk [vmem:[#allocation5] sm:$0xff] (%p586_p7), %vm592_vm0, %v1641_v0 }
  0xc9 PF: > { %vm600_vm1 = vcmask 64512   ;;  %v603_v1 = vld [vmem:[%s489_s18] sm:$0xf]  ;;  %v1642_v2 = vmov 0.0   ;;  %vm1643_vm2 = vmmov 0   ;;  %vm597_vm3 = vcmask 7168  }
  0xca   : > { %1121 = vmatprep.subr.bf16.mxu0 %v1642_v2  ;;  %601 = vst.msk [vmem:[#allocation4] sm:$0xff] %vm600_vm1, %v1642_v2  ;;  %v611_v3 = vsel %vm600_vm1, %v603_v1, 0  ;;  %1123 = vmatprep.mubr.msk.bf16.mxu0 %vm1643_vm2, %v1642_v2  ;;  %v602_v4 = vld [vmem:[%s480_s19] sm:$0xf]  ;;  %v604_v5 = vld [vmem:[%s1995_s27] sm:$0xf] }
  0xcb   : > { %1122 = vmatpush3.bf16.xpose.msra.mxu0 %v611_v3  ;;  %1127 = vmatprep.subr.bf16.mxu1 %v1642_v2  ;;  %v605_v6 = vunpack.c.l.bf16 %v604_v5  ;;  %v1644_v13 = vmov -inf   ;;  %599 = vst.msk [vmem:[#allocation3] sm:$0xff] %vm597_vm3, %v1642_v2  ;;  %v1645_v14 = vmov 0   ;;  %v687_v19 = vld [vmem:[%s498_s30] sm:$0xf]  ;;  %vm691_vm4 = vcmask 1043456  }
  0xcc   : > { %1129 = vmatprep.mubr.msk.bf16.mxu1 %vm1643_vm2, %v1642_v2  ;;  %598 = vst.msk [vmem:[#allocation2] sm:$0xff] %vm597_vm3, %v1644_v13  ;;  %1295 = vset.pattern.permute.xlu0 %v1645_v14  ;;  %v693_v20 = vsel %vm691_vm4, %v687_v19, 0  ;;  %v752_v25 = vld [vmem:[%s516_s14] sm:$0xf]  ;;  %v751_v50 = vld [vmem:[#allocation5] sm:$0xff]  ;;  %vm800_vm5 = vcmask 261120  }
  0xcd   : > { %1296 = vset.pattern.permute.xlu1 %v1645_v14  ;;  %1128 = vmatpush3.bf16.msra.mxu1 %v693_v20  ;;  %v757_v26 = vsel %vm691_vm4, %v752_v25, 0  ;;  %s2215_s26 = sld [smem:[#allocation28_spill]] }
  0xce   : > { %1133 = vmatprep.subr.bf16.mxu1 %v1642_v2 }
  0xd1   : > { %v680_v38 = vld [vmem:[#allocation4] sm:$0xff] }
  0xd2   : > { %1124 = vmatmul.mubr.msk.bf16.vlgmr.msra.gmra.mxu0 %vm600_vm1, %v602_v4  ;;  %v671_v32 = vld [vmem:[#allocation3] sm:$0xff] }
  0xd3   : > { %v653_v15 = vld [vmem:[#allocation2] sm:$0xff]  ;;  %p1106_p0 = scmp.ne.s32.totalorder %s2215_s26, 3 }
  0xd4   : > { %s2216_s5 = sld [smem:[#allocation43_spill]] (!%p1106_p0) }
  0xd5   : > { %s2217_s25 = sld [smem:[#allocation44_spill]] (!%p1106_p0) }
  0xd6   : > { %s2218_s30 = sld [smem:[#allocation45_spill]] (!%p1106_p0) }
 0x192   : > { %v647_v7 = vpop.f32.mrf.mxu0 }
 0x193   : > { %v648_v8 = vadd.f32 %v647_v7, %v605_v6 }
 0x194   : > { %v1125_v9 = vpop.f32.mrf.mxu0 }
 0x195   : > { %v654_v10 = vsel %vm600_vm1, %v648_v8, -inf }
 0x196   : > { %655 = vmax.xlane.f32.xlu0 %v654_v10  ;;  %v650_v11 = vpop.f32.mrf.mxu0 }
 0x198   : > { %v1126_v12 = vpop.f32.mrf.mxu0 }
 0x21f   : > { %v656_v16 = vpop.xlane.xlu0 %655 }
 0x220   : > { %v657_v17 = vmax.f32 %v653_v15, %v656_v16 }
 0x222   : > { %v658_v18 = vsub.f32 %v653_v15, %v657_v17  ;;  %737 = vst.msk [vmem:[#allocation2] sm:$0xff] %vm597_vm3, %v657_v17  ;;  %663 = vperm.xlu0 %1295, %v657_v17  }
 0x224   : > { %v659_v29 = vmul.f32 1.442695, %v658_v18 }
 0x29d   : > { %v664_v21 = vpop.permute.xlu0 %663 }
 0x29e   : > { %v666_v22 = vsub.f32 %v648_v8, %v664_v21 }
 0x2a0   : > { %v667_v23 = vpack.c.bf16 %v666_v22, %v666_v22 }
 0x2a2   : > { %v669_v24 = vmul.bf16 1069105081, %v667_v23 }
 0x2a4   : > { %1297 = vpow.bf16 %v669_v24 }
 0x2a5   : > { %1299 = vpow2.f32 %v659_v29 }
 0x2b2   : > { %v1298_v27 = vpop.eup %1297 }
 0x2b3   : > { %1130 = vmatmul.mubr.msk.bf16.vlgmr.msra.gmra.mxu1 %vm600_vm1, %v1298_v27  ;;  %v673_v28 = vunpack.c.l.bf16 %v1298_v27  ;;  %v1300_v31 = vpop.eup %1299 }
 0x2b4   : > { %1134 = vmatpush3.bf16.msra.mxu1 %v757_v26  ;;  %1135 = vmatprep.mubr.msk.bf16.mxu1 %vm1643_vm2, %v1642_v2  ;;  %v672_v33 = vmul.f32 %v1300_v31, %v671_v32 }
 0x2b5   : > { %v674_v30 = vsel %vm600_vm1, %v673_v28, 0.0 }
 0x2b6   : > { %675 = vadd.xlane.f32.xlu1 %v674_v30 }
 0x2c7   : > { %683 = vperm.xlu1 %1296, %v1300_v31  }
 0x33f   : > { %v676_v34 = vpop.xlane.xlu1 %675 }
 0x340   : > { %v677_v35 = vadd.f32 %v676_v34, %v672_v33 }
 0x342   : > { %679 = vst.msk [vmem:[#allocation3] sm:$0xff] %vm597_vm3, %v677_v35 }
 0x343   : > { %v684_v39 = vpop.permute.xlu1 %683 }
 0x344   : > { %v686_v40 = vmul.f32 %v684_v39, %v680_v38 }
 0x349   : > { %v741_v36 = vld [vmem:[#allocation3] sm:$0xff] }
 0x34a   : > { %1301 = vrcp.f32 %v741_v36 }
 0x357   : > { %v1302_v37 = vpop.eup %1301 }
 0x358   : > { %746 = vperm.xlu1 %1296, %v1302_v37  }
 0x373   : > { %v729_v41 = vpop.f32.mrf.mxu1 }
 0x374   : > { %v735_v42 = vadd.f32 %v729_v41, %v686_v40 }
 0x375   : > { %v1131_v43 = vpop.f32.mrf.mxu1 }
 0x376   : > { %736 = vst.msk [vmem:[#allocation4] sm:$0xff] %vm600_vm1, %v735_v42 }
 0x377   : > { %v732_v44 = vpop.f32.mrf.mxu1 }
 0x379   : > { %v1132_v45 = vpop.f32.mrf.mxu1 }
 0x37d   : > { %v743_v46 = vld [vmem:[#allocation4] sm:$0xff] }
 0x3d3   : > { %v747_v47 = vpop.permute.xlu1 %746 }
 0x3d4   : > { %v749_v48 = vmul.f32 %v747_v47, %v743_v46 }
 0x3d6   : > { %v750_v49 = vpack.c.bf16 %v749_v48, %v749_v48 }
 0x3d8   : > { %1136 = vmatmul.mubr.msk.bf16.vlgmr.msra.gmra.mxu1 %vm600_vm1, %v750_v49 }
 0x498   : > { %v793_v51 = vpop.f32.mrf.mxu1 }
 0x499   : > { %v799_v52 = vadd.f32 %v793_v51, %v751_v50 }
 0x49a   : > { %v1137_v53 = vpop.f32.mrf.mxu1  ;;  %805 = sbr.rel (%p1106_p0) target bundleno = 1363 (0x553), region = 96 }
 0x49b   : > { %801 = vst.msk [vmem:[#allocation5] sm:$0xff] %vm800_vm5, %v799_v52 }
 0x49c   : > { %v796_v54 = vpop.f32.mrf.mxu1 }
 0x49e   : > { %v1138_v55 = vpop.f32.mrf.mxu1 }
 0x49f   : > { %v1107_v57 = vld [vmem:[%s2216_s5] ss:$0 sm:$0xff]  ;;  %v815_v58 = vld [vmem:[%s2011_s12] sm:$0xff] }
 0x4a0   : > { %v1108_v10 = vld [vmem:[%s2217_s25] ss:$0 sm:$0xff] }
 0x4a1   : > { %v1109_v12 = vld [vmem:[%s2218_s30] ss:$0 sm:$0xff] }
 0x4a2   : > { %v806_v56 = vld [vmem:[#allocation5] sm:$0xff] }
 0x4a3   : > { %v814_v59 = vadd.f32 %v1107_v57, %v806_v56 }
 0x4a5   : > { %v816_v60 = vadd.f32 %v815_v58, %v814_v59 }
 0x4a7   : > { %v817_v61 = vsel %vm800_vm5, %v816_v60, 0.0  ;;  %v822_v62 = vmul.f32 %v816_v60, %v816_v60 }
 0x4a8   : > { %818 = vadd.xlane.f32.xlu0 %v817_v61 }
 0x4a9   : > { %v823_v63 = vsel %vm800_vm5, %v822_v62, 0.0 }
 0x4ac   : > { %824 = vadd.xlane.f32.xlu0 %v823_v63 }
 0x531   : > { %v819_v0 = vpop.xlane.xlu0 %818 }
 0x532   : > { %v821_v1 = vmul.f32 0.03125, %v819_v0 }
 0x534   : > { %v827_v3 = vmul.f32 %v821_v1, %v821_v1  ;;  %v830_v8 = vsub.f32 %v816_v60, %v821_v1 }
 0x535   : > { %v825_v2 = vpop.xlane.xlu0 %824 }
 0x536   : > { %v826_v4 = vmul.f32 0.03125, %v825_v2 }
 0x538   : > { %v828_v5 = vsub.f32 %v826_v4, %v827_v3 }
 0x53a   : > { %v829_v6 = vmax.f32 %v828_v5, 0.0 }
 0x53c   : > { %v831_v7 = vadd.f32 1e-12, %v829_v6 }
 0x53e   : > { %1303 = vrsqrt.f32 %v831_v7 }
 0x54b   : > { %v1304_v9 = vpop.eup %1303 }
 0x54c   : > { %v833_v11 = vmul.f32 %v1304_v9, %v830_v8 }
 0x54e   : > { %v841_v13 = vmul.f32 %v1108_v10, %v833_v11 }
 0x550   : > { %v849_v14 = vadd.f32 %v1109_v12, %v841_v13 }
 0x552   : > { %850 = vst.msk [vmem:[%s2018_s8] sm:$0xff] %vm800_vm5, %v849_v14 }
 0x553 PF: > { %s2219_s24 = sld [smem:[#allocation29_spill]]  ;;  %s866_s12 = sshll.u32 %s2018_s8, 4  ;;  %s867_s12 = int_to_ptr.vmem [resolvable:$true] %s866_s12 }
 0x554   : > { %s2220_s27 = sld [smem:[#allocation37_spill]]  ;;  %s852_s15 = scalar_lea.sflag [#allocation8], %s1991_s29 }
 0x555   : > { %s2221_s6 = sld [smem:[#allocation46_spill]]  ;;  %s1473_s26 = scalar_lea.vmem %s867_s12, 128 }
 0x556   : > { %p1474_p11 = scmp.ne.s32.totalorder %s867_s12, %s1473_s26  ;;  %s1646_s13 = smov [#allocation17]  }
 0x557   : > { %s1477_s19 = sshll.u32 %s1646_s13, 4  ;;  %s1478_s19 = int_to_ptr.vmem [resolvable:$false] %s1477_s19 }
 0x558   : > { %s1479_s5 = scalar_lea.vmem %s1478_s19, 256  ;;  %p1480_p13 = scmp.lt.s32.totalorder %s867_s12, %s1478_s19 }
 0x559   : > { %s1111_s23 = sshll.u32 %s2219_s24, 7  ;;  %p1481_p2 = scmp.lt.s32.totalorder %s1479_s5, %s1473_s26 }
 0x55a   : > { %p2222_p1 = scmp.ne.s32.totalorder %s2220_s27, 0 }
 0x55b   : > { %s864_s28 = scalar_lea.hbm %s2221_s6, %s1111_s23  ;;  %p1482_p6 = por %p1481_p2, %p1480_p13 }
 0x55c   : > { %p1475_p10 = pnand %p1474_p11, %p2222_p1 }
 0x55e   : > { %p1476_p12 = pneg %p1475_p10 }
 0x560   : > { %p1483_p8 = pnand %p1482_p6, %p1476_p12 }
 0x562   : > { %1486 = shalt.err (!%p1483_p8)
}
 0x563   : > { %s1487_s3 = scalar_lea.hbm %s864_s28, 128  ;;  %s1491_s18 = scalar_lea.hbm %s2221_s6, 256 }
 0x564   : > { %p1488_p9 = scmp.ne.s32.totalorder %s864_s28, %s1487_s3  ;;  %p1492_p3 = scmp.lt.s32.totalorder %s864_s28, %s2221_s6 }
 0x565   : > { %p1493_p7 = scmp.lt.s32.totalorder %s1491_s18, %s1487_s3 }
 0x566   : > { %p1489_p4 = pnand %p1488_p9, %p2222_p1 }
 0x567   : > { %p1494_p0 = por %p1493_p7, %p1492_p3 }
 0x568   : > { %p1490_p5 = pneg %p1489_p4 }
 0x56a   : > { %p1495_p11 = pnand %p1494_p0, %p1490_p5 }
 0x56c   : > { %1498 = shalt.err (!%p1495_p11)
}
 0x56d   : > { %1151 = dma.vmem_to_hbm [thread:$0]  (%p2222_p1), %s867_s12, 128, %s864_s28, %s852_s15  }
 0x56e PF: > { %s2223_s1 = sld [smem:[#allocation24_spill]]  ;;  %p1177_p10 = scmp.ge.s32.totalorder %s1633_s22, 2 }
 0x56f   : > { %s2224_s30 = sld [smem:[#allocation38_spill]] }
 0x574   : > { %s878_s24 = sand.u32 1, %s2223_s1  }
 0x575   : > { %p2225_p12 = scmp.ne.s32.totalorder %s2224_s30, 0  ;;  %s879_s23 = scalar_lea.sflag [#allocation8], %s878_s24 }
 0x577   : > { %p1173_p13 = pnand %p1177_p10, %p2225_p12 }
 0x579   : > { %p1174_p2 = pneg %p1173_p13 }
 0x57b   : > { %1576 = dma.done.wait (%p1174_p2), %s879_s23, 128  }
 0x57c   : > { %1578 = vsyncadd (%p1174_p2), %s879_s23, 4294967168  ;;  %s34_s22 = sadd.s32 1, %s1633_s22   ;;  %s2227_s12 = sld [smem:[#allocation25_spill]] }
 0x57d   : > { %p2081_p6 = scmp.ge.s32.totalorder %s34_s22, 10   ;;  %s2228_s13 = sld [smem:[#allocation26_spill]] }
 0x57e   : > { %s2229_s14 = sld [smem:[#allocation35_spill]]  ;;  %s2234_s30 = smov %s1585_s10 }
 0x57f   : > { %s2230_s15 = sld [smem:[#allocation27_spill]]  ;;  %s2235_s10 = smov %s1589_s11 }
 0x580   : > { %s2231_s27 = sld [smem:[#allocation33_spill]]  ;;  %s2236_s11 = smov %s1933_s7 }
 0x581   : > { %s2232_s28 = sld [smem:[#allocation30_spill]]  ;;  %s2237_s16 = smov %s1613_s17 }
 0x582   : > { %s2233_s26 = sld [smem:[#allocation31_spill]]  ;;  %s2239_s18 = smov %s1625_s20 }
 0x583   : > { %s2240_s19 = smov %s1629_s21 }
 0x584   :  { %33 = sbr.rel (!%p2081_p6) target bundleno = 24 (0x18), region = 178 }
 0x586   : > { %s2238_s17 = smov %s2231_s27 }
 0x587   : > { %s2241_s20 = smov %s2232_s28 }
 0x588   : > { %s2242_s21 = smov %s2233_s26 }
 0x589   :  { %884 = vsyncpa [#allocation7], 1 }
 0x58a   :  { %886 = vsyncpa [#allocation7 + $0x1], 1 }
 0x58b   :  { %887 = vsyncpa [#allocation10], 1 }
 0x58c   :  { %889 = vsyncpa [#allocation10 + $0x1], 1 }
 0x58d   :  { %890 = vsyncpa [#allocation13], 1 }
 0x58e   :  { %892 = vsyncpa [#allocation13 + $0x1], 1 }
 0x58f   :  { %893 = vsyncpa [#allocation16], 1 }
 0x590   :  { %895 = vsyncpa [#allocation16 + $0x1], 1 }
 0x591   :  { %896 = vsyncpa [#allocation8], 1 }
 0x592   :  { %898 = vsyncpa [#allocation8 + $0x1], 1 }

</bundles_post_ra>
